<compile_context>
chip_gen: v5e
topology: v5e:2x2
jax: 0.10.0
libtpu: 0.0.40
codegen_flags: <defaults>
</compile_context>

<pallas_src>
import jax
import jax.numpy as jnp
from jax.experimental import pallas as pl
from jax.experimental.pallas import tpu as pltpu


def _cat_tanh_kernel(x_ref, ty_ref, o_ref):
    # x_ref : (TB, Fx)          input tile
    # ty_ref: (TB, F) or (1, F) tanh(y) constant, already placed at columns [Fx:F)
    # o_ref : (TB, F)           output tile
    fx = x_ref.shape[1]
    ty = ty_ref[...]
    if ty.shape[0] != o_ref.shape[0]:
        # y identical for every batch row (B > 2 stack branch): broadcast the single
        # constant row across sublanes in-register (no HBM replication).
        ty = jnp.broadcast_to(ty, (o_ref.shape[0], ty.shape[1]))
    # Single full-width, lane-dense store of the pre-placed constant half.
    o_ref[...] = ty
    # Overwrite the x prefix with tanh(x): store starts at lane 0 (no lane rotate),
    # masked only at the vreg tail past column fx.
    o_ref[:, :fx] = jnp.tanh(x_ref[...])


def _fused_cat_tanh(x_flat, ty_full):
    """Fused cat([x, y], 1).view(B, -1) -> tanh, with tanh(y) pre-folded in ty_full."""
    B, fx = x_flat.shape
    by, f_out = ty_full.shape

    # Batch tile: whole batch for small B; 512-row (multiple-of-8 sublane) tiles when
    # B scales, so the pipeline overlaps DMA of block i+1 with tanh of block i.
    # (Working set 2*(TB*fx + TB*f_out)*4 B stays far under even v7x's 64 MiB VMEM.)
    tb = B if B <= 512 else 512
    grid = (pl.cdiv(B, tb),)

    if by == B:
        ty_spec = pl.BlockSpec((tb, f_out), lambda i: (i, 0))
    else:  # by == 1: single broadcast constant row
        ty_spec = pl.BlockSpec((1, f_out), lambda i: (0, 0))

    cost = pl.CostEstimate(
        flops=0,
        transcendentals=B * fx,  # only tanh(x); tanh(y) is constant-folded
        bytes_accessed=4 * (B * fx + by * f_out + B * f_out),
    )

    return pl.pallas_call(
        _cat_tanh_kernel,
        out_shape=jax.ShapeDtypeStruct((B, f_out), jnp.float32),
        grid=grid,
        in_specs=[
            pl.BlockSpec((tb, fx), lambda i: (i, 0)),
            ty_spec,
        ],
        out_specs=pl.BlockSpec((tb, f_out), lambda i: (i, 0)),
        compiler_params=pltpu.CompilerParams(dimension_semantics=("parallel",)),
        cost_estimate=cost,
    )(x_flat, ty_full)


@jax.jit
def model_forward(x):
    """Reproduces Model.forward. x: (2, C, 4) for B == 2, or (B, C, 3, 4) for B > 2."""
    x = jnp.asarray(x)
    B = x.shape[0]
    if B < 2:
        # torch.cat([x, y], dim=1) would raise a shape-mismatch error for B < 2.
        raise ValueError("batch dim must be >= 2 to match torch.cat semantics")

    # cat along dim=1 followed by view(B, -1) == concat of per-batch-flattened operands.
    x_flat = x.reshape(B, -1).astype(jnp.float32)
    fx = x_flat.shape[1]

    if B > 2:
        # Stack branch: y -> (B, 2, 3, 4); every per-batch flatten is the same 24-wide
        # row, so build ONE tanh'ed constant row, pre-placed at columns [fx:fx+24).
        ty = jnp.tanh(jnp.arange(24, dtype=jnp.float32)).reshape(1, 24)
        ty_full = jnp.concatenate([jnp.zeros((1, fx), jnp.float32), ty], axis=1)
    else:
        # B == 2: y stays (2, 3, 4); the two per-batch flattened rows differ.
        ty = jnp.tanh(jnp.arange(24, dtype=jnp.float32)).reshape(2, 12)
        ty_full = jnp.concatenate([jnp.zeros((2, fx), jnp.float32), ty], axis=1)

    # All of ty_full is built from constants -> XLA constant-folds it at compile time.
    return _fused_cat_tanh(x_flat, ty_full)


if __name__ == "__main__":
    key = jax.random.PRNGKey(0)

    # Primary (faithful) path: x of shape (2, 3, 4) so torch.cat([x, y], dim=1) is valid.
    x = jax.random.normal(key, (2, 3, 4), dtype=jnp.float32)
    out = jax.block_until_ready(model_forward(x))

    y_ref = jnp.arange(24, dtype=jnp.float32).reshape(2, 3, 4)
    z_ref = jnp.concatenate([x, y_ref], axis=1)
    ref = jnp.tanh(z_ref.reshape(z_ref.shape[0], -1))
    assert out.shape == (2, 24), out.shape
    assert jnp.allclose(out, ref, atol=1e-6, rtol=1e-6)

    # Stack-branch path (B > 2): x is 4-D (B, C, 3, 4) so the PyTorch cat is valid.
    xb = jax.random.normal(jax.random.PRNGKey(1), (4, 2, 3, 4), dtype=jnp.float32)
    outb = jax.block_until_ready(model_forward(xb))
    yb_ref = jnp.broadcast_to(
        jnp.arange(24, dtype=jnp.float32).reshape(1, 2, 3, 4), (4, 2, 3, 4)
    )
    zb_ref = jnp.concatenate([xb, yb_ref], axis=1)
    refb = jnp.tanh(zb_ref.reshape(4, -1))
    assert outb.shape == (4, 48), outb.shape
    assert jnp.allclose(outb, refb, atol=1e-6, rtol=1e-6)

    print("KERNEL_OK")
</pallas_src>

<mosaic_0001>
module attributes {stable_mosaic.version = 11 : i64} {
  func.func @_cat_tanh_kernel(%arg0: i32, %arg1: memref<2x12xf32, #tpu.memory_space<vmem>>, %arg2: memref<2x24xf32, #tpu.memory_space<vmem>>, %arg3: memref<2x24xf32, #tpu.memory_space<vmem>>) attributes {dimension_semantics = [#tpu.dimension_semantics<parallel>], iteration_bounds = array<i64: 1>, scalar_prefetch = 0 : i64, scratch_operands = 0 : i64, tpu.core_type = #tpu.core_type<tc>, window_params = [{transform_indices = @transform_0, window_bounds = array<i64: 2, 12>}, {transform_indices = @transform_1, window_bounds = array<i64: 2, 24>}, {transform_indices = @transform_2, window_bounds = array<i64: 2, 24>}]} {
    %c0 = arith.constant 0 : index
    %c0_0 = arith.constant 0 : index
    %0 = vector.load %arg2[%c0, %c0_0] : memref<2x24xf32, #tpu.memory_space<vmem>>, vector<2x24xf32>
    %c0_1 = arith.constant 0 : index
    %c0_2 = arith.constant 0 : index
    %1 = vector.load %arg3[%c0_1, %c0_2] : memref<2x24xf32, #tpu.memory_space<vmem>>, vector<2x24xf32>
    tpu.vector_store %arg3[%c0_1, %c0_2], %0 {strides = array<i32>} : memref<2x24xf32, #tpu.memory_space<vmem>>, vector<2x24xf32>,
    %c0_3 = arith.constant 0 : index
    %c0_4 = arith.constant 0 : index
    %2 = vector.load %arg1[%c0_3, %c0_4] : memref<2x12xf32, #tpu.memory_space<vmem>>, vector<2x12xf32>
    %3 = math.tanh %2 : vector<2x12xf32>
    %c0_5 = arith.constant 0 : index
    %c0_6 = arith.constant 0 : index
    %4 = vector.load %arg3[%c0_5, %c0_6] : memref<2x24xf32, #tpu.memory_space<vmem>>, vector<2x12xf32>
    tpu.vector_store %arg3[%c0_5, %c0_6], %3 {strides = array<i32>} : memref<2x24xf32, #tpu.memory_space<vmem>>, vector<2x12xf32>,
    return
  }
  func.func @transform_0(%arg0: i32) -> (i32, i32) {
    %c0_i32 = arith.constant 0 : i32
    %c0_i32_0 = arith.constant 0 : i32
    return %arg0, %c0_i32 : i32, i32
  }
  func.func @transform_1(%arg0: i32) -> (i32, i32) {
    %c0_i32 = arith.constant 0 : i32
    %c0_i32_0 = arith.constant 0 : i32
    return %arg0, %c0_i32 : i32, i32
  }
  func.func @transform_2(%arg0: i32) -> (i32, i32) {
    %c0_i32 = arith.constant 0 : i32
    %c0_i32_0 = arith.constant 0 : i32
    return %arg0, %c0_i32 : i32, i32
  }
}

</mosaic_0001>

<bundles_post_ra>
// kernel: model_forward.1
= control target key start
LH: loop header
LB: loop body
LE: loop exit
PB: predicated region body
PF: predicated region fallthrough
CT: control target
= control target key end

     0   :  { %vm13_vm0 = vcmask 189440   ;;  %s89_s0 = inlined_call_operand.vmem [shape: f32[2,12], index: 0, kind: input, shape index: {}]   ;;  %s90_s1 = inlined_call_operand.vmem [shape: f32[2,24], index: 1, kind: input, shape index: {}]   ;;  %s91_s2 = inlined_call_operand.hbm [shape: f32[2,24], index: 2, kind: output, shape index: {}]  }
   0x1   :  { %v12_v0 = vld [vmem:[%s90_s1] sm:$0x3] }
   0x2   :  { %v15_v1 = vld [vmem:[%s89_s0] sm:$0x3]  ;;  %14 = vst.msk [vmem:[#allocation2] sm:$0x3] %vm13_vm0, %v12_v0 }
   0x3   :  { %36 = vtanh.f32 %v15_v1 }
   0x4   :  { %7 = vsyncpa [#allocation3], 0  ;;  %s64_s13 = smov [#allocation2]   ;;  %s26_s17 = sshll.u32 %s91_s2, 4  ;;  %vm17_vm1 = vcmask 91136   ;;  %s27_s17 = int_to_ptr.hbm [resolvable:$true] %s26_s17 }
   0x5   :  { %s24_s14 = sshll.u32 %s64_s13, 4  ;;  %s25_s14 = int_to_ptr.vmem [resolvable:$true] %s24_s14 }
   0x9   :  { %v37_v2 = vpop.eup %36 }
   0xa   :  { %18 = vst.msk [vmem:[#allocation2] sm:$0x3] %vm17_vm1, %v37_v2 }
   0xb   :  { %29 = dma.vmem_to_hbm [thread:$0]  %s25_s14, 32, %s27_s17, [#allocation3]  }
   0xc   :  { %62 = dma.done.wait [#allocation3], 32  }
   0xd   :  { %63 = vsyncadd [#allocation3], 4294967264 }
   0xe   :  { %34 = vsyncpa [#allocation3], 1 }

</bundles_post_ra>
